<compile_context>
chip_gen: v5e
topology: v5e:2x2
jax: 0.10.0
libtpu: 0.0.40
codegen_flags: <defaults>
</compile_context>

<pallas_src>
import jax
import jax.numpy as jnp
from jax import lax
from jax.experimental import pallas as pl
from jax.experimental.pallas import tpu as pltpu


def _round_up(x, m):
    return (x + m - 1) // m * m


def _gemm_shift_relu_kernel(p_ref, w_ref, shift_ref, o_ref):
    # p_ref:     (block_m, K)        bf16 im2col patches (K = 9*Cin)
    # w_ref:     (K, Cout_pad)       bf16 conv weights with BN scale folded in
    # shift_ref: (1, Cout_pad)       f32  BN shift (beta - mean*scale)
    # o_ref:     (block_m, Cout_pad) f32
    acc = jnp.dot(p_ref[...], w_ref[...], preferred_element_type=jnp.float32)
    o_ref[...] = jnp.maximum(acc + shift_ref[...], 0.0).astype(o_ref.dtype)


def conv_bn_relu(x_nchw, weight_oihw, gamma, beta, running_mean, running_var,
                 eps=1e-5, block_m=128):
    """Forward of _ConvBNRelu (kernel=3, stride=1, padding=1, dilation=1,
    groups=1, bias=False), eval-mode BatchNorm, fused ReLU."""
    N, Cin, H, W = x_nchw.shape
    Cout, _, KH, KW = weight_oihw.shape
    assert (KH, KW) == (3, 3), "this kernel implements the 3x3 s1 p1 case"

    # ---- Fold eval-mode BN into the conv (exact: BN is linear). -------------
    scale = gamma.astype(jnp.float32) / jnp.sqrt(running_var.astype(jnp.float32) + eps)
    shift = beta.astype(jnp.float32) - running_mean.astype(jnp.float32) * scale
    w_scaled = weight_oihw.astype(jnp.float32) * scale[:, None, None, None]

    # (Cout, Cin, KH, KW) -> (KH, KW, Cin, Cout) -> (K, Cout); row = (kh*KW+kw)*Cin+ci.
    K = KH * KW * Cin
    w_packed = jnp.transpose(w_scaled, (2, 3, 1, 0)).reshape(K, Cout)

    # Lane-dense output: pad Cout to a multiple of 128.
    cout_pad = _round_up(Cout, 128)
    w_packed = jnp.pad(w_packed, ((0, 0), (0, cout_pad - Cout))).astype(jnp.bfloat16)
    shift2d = jnp.pad(shift, (0, cout_pad - Cout)).reshape(1, cout_pad)

    # ---- im2col: NCHW -> NHWC, spatial zero-pad, gather the 9 taps ----------
    # (tap order matches the packed weight rows).
    x_nhwc = jnp.transpose(x_nchw, (0, 2, 3, 1))
    x_sp = jnp.pad(x_nhwc, ((0, 0), (1, 1), (1, 1), (0, 0)))
    cols = [x_sp[:, kh:kh + H, kw:kw + W, :] for kh in range(KH) for kw in range(KW)]
    patches = jnp.concatenate(cols, axis=-1).reshape(N * H * W, K).astype(jnp.bfloat16)

    # Flatten batch into M and pad to a multiple of block_m.
    M = N * H * W
    m_pad = _round_up(M, block_m)
    patches = jnp.pad(patches, ((0, m_pad - M), (0, 0)))

    out = pl.pallas_call(
        _gemm_shift_relu_kernel,
        out_shape=jax.ShapeDtypeStruct((m_pad, cout_pad), jnp.float32),
        grid=(m_pad // block_m,),
        in_specs=[
            pl.BlockSpec((block_m, K), lambda m: (m, 0)),
            pl.BlockSpec((K, cout_pad), lambda m: (0, 0)),
            pl.BlockSpec((1, cout_pad), lambda m: (0, 0)),
        ],
        out_specs=pl.BlockSpec((block_m, cout_pad), lambda m: (m, 0)),
        compiler_params=pltpu.CompilerParams(
            dimension_semantics=("parallel",),
            vmem_limit_bytes=32 * 1024 * 1024,
        ),
    )(patches, w_packed, shift2d)

    # Drop M / Cout padding, back to NCHW to match the PyTorch module.
    y = out[:M, :Cout].reshape(N, H, W, Cout)
    return jnp.transpose(y, (0, 3, 1, 2))


def _reference(x_nchw, weight_oihw, gamma, beta, running_mean, running_var,
               eps=1e-5, matmul_dtype=jnp.float32):
    """BN-folded conv reference; matmul_dtype=bf16 mirrors the kernel's input cast."""
    scale = gamma.astype(jnp.float32) / jnp.sqrt(running_var.astype(jnp.float32) + eps)
    shift = beta.astype(jnp.float32) - running_mean.astype(jnp.float32) * scale
    w_scaled = (weight_oihw.astype(jnp.float32) * scale[:, None, None, None]).astype(matmul_dtype)
    x_nhwc = jnp.transpose(x_nchw, (0, 2, 3, 1)).astype(matmul_dtype)
    w_hwio = jnp.transpose(w_scaled, (2, 3, 1, 0))
    conv = lax.conv_general_dilated(
        x_nhwc, w_hwio, window_strides=(1, 1), padding=((1, 1), (1, 1)),
        dimension_numbers=("NHWC", "HWIO", "NHWC"),
        preferred_element_type=jnp.float32)
    y = jnp.maximum(conv + shift, 0.0)
    return jnp.transpose(y, (0, 3, 1, 2))


if __name__ == "__main__":
    # Small shapes: batch=2, in_channels=4, out_channels=8, spatial=16x16.
    N, Cin, Cout, H, W = 2, 4, 8, 16, 16

    key = jax.random.PRNGKey(0)
    k_x, k_w, k_g, k_b, k_m, k_v = jax.random.split(key, 6)

    x = jax.random.normal(k_x, (N, Cin, H, W), dtype=jnp.float32)
    weight = 0.1 * jax.random.normal(k_w, (Cout, Cin, 3, 3), dtype=jnp.float32)
    gamma = 1.0 + 0.1 * jax.random.normal(k_g, (Cout,), dtype=jnp.float32)
    beta = 0.1 * jax.random.normal(k_b, (Cout,), dtype=jnp.float32)
    running_mean = 0.1 * jax.random.normal(k_m, (Cout,), dtype=jnp.float32)
    running_var = jnp.abs(jax.random.normal(k_v, (Cout,), dtype=jnp.float32)) + 0.5

    out = conv_bn_relu(x, weight, gamma, beta, running_mean, running_var)
    out = jax.block_until_ready(out)
    assert out.shape == (N, Cout, H, W), out.shape

    # Precision-matched reference (same bf16 input cast, f32 accumulate).
    ref_bf16 = _reference(x, weight, gamma, beta, running_mean, running_var,
                          matmul_dtype=jnp.bfloat16)
    assert jnp.allclose(out, ref_bf16, atol=1e-3, rtol=1e-3), "mismatch vs bf16 reference"

    # Loose sanity check against full-f32 conv (bf16 input quantization only diff).
    ref_f32 = _reference(x, weight, gamma, beta, running_mean, running_var,
                         matmul_dtype=jnp.float32)
    assert jnp.allclose(out, ref_f32, atol=1e-1, rtol=1e-1), "mismatch vs f32 reference"

    print("KERNEL_OK")
</pallas_src>

<mosaic_0001>
module attributes {stable_mosaic.version = 11 : i64} {
  func.func @_gemm_shift_relu_kernel(%arg0: i32, %arg1: memref<128x36xbf16, #tpu.memory_space<vmem>>, %arg2: memref<36x128xbf16, #tpu.memory_space<vmem>>, %arg3: memref<1x128xf32, #tpu.memory_space<vmem>>, %arg4: memref<128x128xf32, #tpu.memory_space<vmem>>) attributes {dimension_semantics = [#tpu.dimension_semantics<parallel>], iteration_bounds = array<i64: 4>, scalar_prefetch = 0 : i64, scratch_operands = 0 : i64, tpu.core_type = #tpu.core_type<tc>, window_params = [{transform_indices = @transform_0, window_bounds = array<i64: 128, 36>}, {pipeline_mode = #tpu.pipeline_mode<synchronous>, transform_indices = @transform_1, window_bounds = array<i64: 36, 128>}, {pipeline_mode = #tpu.pipeline_mode<synchronous>, transform_indices = @transform_2, window_bounds = array<i64: 1, 128>}, {transform_indices = @transform_3, window_bounds = array<i64: 128, 128>}]} {
    %c0 = arith.constant 0 : index
    %c0_0 = arith.constant 0 : index
    %0 = vector.load %arg1[%c0, %c0_0] : memref<128x36xbf16, #tpu.memory_space<vmem>>, vector<128x36xbf16>
    %c0_1 = arith.constant 0 : index
    %c0_2 = arith.constant 0 : index
    %1 = vector.load %arg2[%c0_1, %c0_2] : memref<36x128xbf16, #tpu.memory_space<vmem>>, vector<36x128xbf16>
    %cst = arith.constant dense<0.000000e+00> : vector<128x128xf32>
    %2 = tpu.matmul %0, %1, %cst {dimension_numbers = #tpu.dot_dimension_numbers<[1], [0], [0], [1], [0, 0, 1, 1], [], []>} : vector<128x36xbf16>, vector<36x128xbf16>, vector<128x128xf32> -> vector<128x128xf32>
    %c0_3 = arith.constant 0 : index
    %c0_4 = arith.constant 0 : index
    %3 = vector.load %arg3[%c0_3, %c0_4] : memref<1x128xf32, #tpu.memory_space<vmem>>, vector<1x128xf32>
    %4 = vector.broadcast %3 : vector<1x128xf32> to vector<128x128xf32>
    %5 = arith.addf %2, %4 : vector<128x128xf32>
    %cst_5 = arith.constant 0.000000e+00 : f32
    %6 = vector.broadcast %cst_5 : f32 to vector<128x128xf32>
    %7 = arith.maximumf %5, %6 : vector<128x128xf32>
    %c0_6 = arith.constant 0 : index
    %c0_7 = arith.constant 0 : index
    %8 = vector.load %arg4[%c0_6, %c0_7] : memref<128x128xf32, #tpu.memory_space<vmem>>, vector<128x128xf32>
    tpu.vector_store %arg4[%c0_6, %c0_7], %7 {strides = array<i32>} : memref<128x128xf32, #tpu.memory_space<vmem>>, vector<128x128xf32>,
    return
  }
  func.func @transform_0(%arg0: i32) -> (i32, i32) {
    %c0_i32 = arith.constant 0 : i32
    %c0_i32_0 = arith.constant 0 : i32
    return %arg0, %c0_i32 : i32, i32
  }
  func.func @transform_1(%arg0: i32) -> (i32, i32) {
    %c0_i32 = arith.constant 0 : i32
    %c0_i32_0 = arith.constant 0 : i32
    %c0_i32_1 = arith.constant 0 : i32
    return %c0_i32, %c0_i32_0 : i32, i32
  }
  func.func @transform_2(%arg0: i32) -> (i32, i32) {
    %c0_i32 = arith.constant 0 : i32
    %c0_i32_0 = arith.constant 0 : i32
    %c0_i32_1 = arith.constant 0 : i32
    return %c0_i32, %c0_i32_0 : i32, i32
  }
  func.func @transform_3(%arg0: i32) -> (i32, i32) {
    %c0_i32 = arith.constant 0 : i32
    %c0_i32_0 = arith.constant 0 : i32
    return %arg0, %c0_i32 : i32, i32
  }
}

</mosaic_0001>

<bundles_post_ra>
// kernel: tpu_custom_call.1
= control target key start
LH: loop header
LB: loop body
LE: loop exit
PB: predicated region body
PF: predicated region fallthrough
CT: control target
= control target key end

     0   :  { %8 = vsyncpa [#allocation3], 0  ;;  %s794_s0 = inlined_call_operand.vmem [shape: bf16[512,36], index: 0, kind: input, shape index: {}]   ;;  %s795_s1 = inlined_call_operand.vmem [shape: bf16[36,128], index: 1, kind: input, shape index: {}]   ;;  %s796_s2 = inlined_call_operand.vmem [shape: f32[1,128], index: 2, kind: input, shape index: {}]   ;;  %s797_s3 = inlined_call_operand.hbm [shape: f32[512,128], index: 3, kind: output, shape index: {}]  }
   0x1   :  { %10 = vsyncpa [#allocation3 + $0x1], 0  ;;  %s649_s12 = smov 0   ;;  %s651_s13 = smov 0  }
   0x2   :  { %s653_s14 = smov 0   ;;  %s655_s15 = smov 0  }
   0x3 LB: > { %s670_s16 = sadd.s32 4294967295, %s625_s15   ;;  %s441_s17 = sadd.s32 4294967294, %s625_s15   ;;  %s625_s15 = sphi %s655_s15, %s803_s15   ;;  %s621_s14 = sphi %s653_s14, %s802_s14   ;;  %s617_s13 = sphi %s651_s13, %s801_s13   ;;  %s613_s12 = sphi %s649_s12, %s800_s12  }
   0x4   : > { %s674_s18 = sadd.s32 1, %s625_s15   ;;  %s91_s19 = sadd.s32 1, %s621_s14 }
   0x5   : > { %s88_s20 = ssub.s32 %s625_s15, %s674_s18  ;;  %p101_p0 = scmp.ne.s32.totalorder %s621_s14, %s617_s13 }
   0x6   : > { %p89_p1 = scmp.eq.s32.totalorder %s88_s20, 0  ;;  %p102_p2 = scmp.eq.s32.totalorder %s670_s16, 3 }
   0x7   : > { %p107_p3 = scmp.ne.s32.totalorder %s617_s13, %s613_s12  ;;  %p108_p4 = scmp.eq.s32.totalorder %s441_s17, 3 }
   0x8   : > { %s685_s21 = scalar_select %p89_p1, %s621_s14, %s91_s19  }
   0x9   : > { %p687_p5 = por %p102_p2, %p101_p0  ;;  %p691_p6 = por %p108_p4, %p107_p3 }
   0xa   : > { %p444_p7 = scmp.ge.s32.totalorder %s625_s15, 1  ;;  %p141_p8 = scmp.lt.s32.totalorder %s625_s15, 5 }
   0xc   : > { %p142_p9 = pnand %p444_p7, %p141_p8 }
   0xd   : > { %s446_s26 = sshll.u32 (!%p142_p9), %s670_s16, 4  ;;  %s162_s8 = sand.u32 (!%p142_p9), 1, %s617_s13  }
   0xe   : > { %145 = sbr.rel (%p142_p9) target bundleno = 202 (0xca), region = 32  ;;  %p166_p10 = scmp.lt.s32.totalorder (!%p142_p9), %s446_s26, 63 }
   0xf   : > { %s445_s11 = sshll.u32 (!%p142_p9), %s162_s8, 7  ;;  %s511_s19 = sshll.u32 (!%p142_p9), %s670_s16, 7 }
  0x10   : > { %s728_s17 = scalar_lea.vmem (!%p142_p9), [#allocation2], %s445_s11  ;;  %s375_s25 = scalar_lea.hbm (!%p142_p9), %s797_s3, %s511_s19 }
  0x11   : > { %s378_s16 = sshll.u32 (!%p142_p9), %s375_s25, 4  ;;  %s364_s27 = scalar_lea.sflag (!%p142_p9), [#allocation3], %s162_s8  ;;  %s379_s16 = int_to_ptr.hbm [resolvable:$true] %s378_s16 }
  0x12   : > { %s577_s28 = sshra.s32 (!%p142_p9), %s379_s16, 4  ;;  %s583_s5 = scalar_lea.hbm (!%p142_p9), %s797_s3, 512  ;;  %s578_s28 = int_to_ptr.hbm [resolvable:$true] %s577_s28 }
  0x13   : > { %v193_v0 = vld [vmem:[%s795_s1 + $0x10] sm:$0x3]  ;;  %vm278_vm0 = vcmask 1041408   ;;  %s805_s26 = smov (!%p166_p10, %s446_s26), 63  ;;  %v510_v4 = vld [vmem:[%s795_s1 + $0x8] sm:$0xff]  ;;  %v509_v5 = vld [vmem:[%s795_s1] sm:$0xff]  ;;  %p584_p0 = scmp.lt.s32.totalorder %s578_s28, %s797_s3 }
  0x14   : > { %v247_v1 = vunpack.c.l.b16 %v193_v0  ;;  %s447_s29 = sshll.u32 %s805_s26, 2  ;;  %vm253_vm1 = vcmask 293888   ;;  %v722_v14 = vld [vmem:[%s796_s2] ss:$0 sm:$0xff]  ;;  %s376_s26 = sshll.u32 %s728_s17, 4  ;;  %s377_s26 = int_to_ptr.vmem [resolvable:$true] %s376_s26 }
  0x15   : > { %s169_s7 = scalar_lea.vmem %s794_s0, %s447_s29  ;;  %s579_s29 = scalar_lea.hbm %s578_s28, 128 }
  0x16   : > { %v250_v2 = vpack.c.b16 %v247_v1, %v247_v1  ;;  %v501_v6 = vld [vmem:[%s169_s7] sm:$0xff]  ;;  %v503_v7 = vld [vmem:[%s169_s7 + $0x10] sm:$0xff]  ;;  %v502_v10 = vld [vmem:[%s169_s7 + $0x8] sm:$0xff]  ;;  %p580_p11 = scmp.ne.s32.totalorder %s578_s28, %s579_s29  ;;  %p585_p1 = scmp.lt.s32.totalorder %s583_s5, %s579_s29 }
  0x17   : > { %v505_v8 = vld [vmem:[%s169_s7 + $0x20] sm:$0xff]  ;;  %v507_v9 = vld [vmem:[%s169_s7 + $0x30] sm:$0xff]  ;;  %v504_v11 = vld [vmem:[%s169_s7 + $0x18] sm:$0xff] }
  0x18   : > { %v280_v3 = vsel %vm278_vm0, %v250_v2, 0  ;;  %v506_v12 = vld [vmem:[%s169_s7 + $0x28] sm:$0xff]  ;;  %v508_v13 = vld [vmem:[%s169_s7 + $0x38] sm:$0xff]  ;;  %p581_p12 = pnand %p580_p11, %p687_p5  ;;  %p586_p2 = por %p585_p1, %p584_p0 }
  0x19   : > { %287 = vmatpush.bf16.msra.mxu0 %v280_v3  ;;  %512 = vmatpush.bf16.msra.mxu1 %v280_v3 }
  0x1a   : > { %513 = vmatpush.bf16.msra.mxu2 %v280_v3  ;;  %514 = vmatpush.bf16.msra.mxu3 %v280_v3  ;;  %p582_p13 = pneg %p581_p12 }
  0x1c   : > { %p587_p3 = pnand %p586_p2, %p582_p13 }
  0x1d   : > { %288 = vmatpush.bf16.msra.mxu0 %v510_v4  ;;  %515 = vmatpush.bf16.msra.mxu1 %v510_v4 }
  0x1e   : > { %516 = vmatpush.bf16.msra.mxu2 %v510_v4  ;;  %517 = vmatpush.bf16.msra.mxu3 %v510_v4 }
  0x21   : > { %289 = vmatpush.bf16.msra.mxu0 %v509_v5  ;;  %518 = vmatpush.bf16.msra.mxu1 %v509_v5 }
  0x22   : > { %519 = vmatpush.bf16.msra.mxu2 %v509_v5  ;;  %520 = vmatpush.bf16.msra.mxu3 %v509_v5 }
  0x24   : > { %488 = vmatmul.msk.bf16.vlgmr.msra.gmra.mxu0 %vm253_vm1, %v501_v6  ;;  %490 = vmatmul.msk.bf16.vlgmr.msra.gmra.mxu1 %vm253_vm1, %v503_v7 }
  0x25   : > { %492 = vmatmul.msk.bf16.vlgmr.msra.gmra.mxu2 %vm253_vm1, %v505_v8  ;;  %494 = vmatmul.msk.bf16.vlgmr.msra.gmra.mxu3 %vm253_vm1, %v507_v9 }
  0x34   : > { %489 = vmatmul.msk.bf16.gmra.mxu0 %vm253_vm1, %v502_v10  ;;  %491 = vmatmul.msk.bf16.gmra.mxu1 %vm253_vm1, %v504_v11 }
  0x35   : > { %493 = vmatmul.msk.bf16.gmra.mxu2 %vm253_vm1, %v506_v12  ;;  %495 = vmatmul.msk.bf16.gmra.mxu3 %vm253_vm1, %v508_v13 }
  0xa1   : > { %v291_v15 = vpop.f32.mrf.mxu0  ;;  %v301_v16 = vpop.f32.mrf.mxu1 }
  0xa2   : > { %v292_v17 = vadd.f32 %v722_v14, %v291_v15  ;;  %v302_v18 = vadd.f32 %v722_v14, %v301_v16 }
  0xa4   : > { %v331_v19 = vmax.f32 %v292_v17, 0.0  ;;  %v335_v20 = vmax.f32 %v302_v18, 0.0 }
  0xa6   : > { %347 = vst [vmem:[%s728_s17] sm:$0xff] %v331_v19 }
  0xa7   : > { %351 = vst [vmem:[%s728_s17 + $0x20] sm:$0xff] %v335_v20 }
  0xa8   : > { %v311_v21 = vpop.f32.mrf.mxu2  ;;  %v321_v22 = vpop.f32.mrf.mxu3 }
  0xa9   : > { %v312_v23 = vadd.f32 %v722_v14, %v311_v21  ;;  %v322_v24 = vadd.f32 %v722_v14, %v321_v22  ;;  %v293_v25 = vpop.f32.mrf.mxu0  ;;  %v303_v26 = vpop.f32.mrf.mxu1 }
  0xaa   : > { %v294_v27 = vadd.f32 %v722_v14, %v293_v25  ;;  %v304_v28 = vadd.f32 %v722_v14, %v303_v26 }
  0xab   : > { %v339_v29 = vmax.f32 %v312_v23, 0.0  ;;  %v343_v30 = vmax.f32 %v322_v24, 0.0 }
  0xac   : > { %v332_v31 = vmax.f32 %v294_v27, 0.0  ;;  %v336_v32 = vmax.f32 %v304_v28, 0.0 }
  0xad   : > { %355 = vst [vmem:[%s728_s17 + $0x40] sm:$0xff] %v339_v29 }
  0xae   : > { %359 = vst [vmem:[%s728_s17 + $0x60] sm:$0xff] %v343_v30 }
  0xaf   : > { %348 = vst [vmem:[%s728_s17 + $0x8] sm:$0xff] %v332_v31 }
  0xb0   : > { %352 = vst [vmem:[%s728_s17 + $0x28] sm:$0xff] %v336_v32  ;;  %v313_v33 = vpop.f32.mrf.mxu2  ;;  %v323_v34 = vpop.f32.mrf.mxu3 }
  0xb1   : > { %v314_v35 = vadd.f32 %v722_v14, %v313_v33  ;;  %v324_v36 = vadd.f32 %v722_v14, %v323_v34  ;;  %v296_v37 = vpop.f32.mrf.mxu0  ;;  %v306_v38 = vpop.f32.mrf.mxu1 }
  0xb2   : > { %v297_v39 = vadd.f32 %v722_v14, %v296_v37  ;;  %v307_v40 = vadd.f32 %v722_v14, %v306_v38 }
  0xb3   : > { %v340_v41 = vmax.f32 %v314_v35, 0.0  ;;  %v344_v42 = vmax.f32 %v324_v36, 0.0 }
  0xb4   : > { %v333_v43 = vmax.f32 %v297_v39, 0.0  ;;  %v337_v44 = vmax.f32 %v307_v40, 0.0 }
  0xb5   : > { %356 = vst [vmem:[%s728_s17 + $0x48] sm:$0xff] %v340_v41 }
  0xb6   : > { %360 = vst [vmem:[%s728_s17 + $0x68] sm:$0xff] %v344_v42 }
  0xb7   : > { %349 = vst [vmem:[%s728_s17 + $0x10] sm:$0xff] %v333_v43 }
  0xb8   : > { %353 = vst [vmem:[%s728_s17 + $0x30] sm:$0xff] %v337_v44  ;;  %v316_v45 = vpop.f32.mrf.mxu2  ;;  %v326_v46 = vpop.f32.mrf.mxu3 }
  0xb9   : > { %v317_v47 = vadd.f32 %v722_v14, %v316_v45  ;;  %v327_v48 = vadd.f32 %v722_v14, %v326_v46  ;;  %v298_v49 = vpop.f32.mrf.mxu0  ;;  %v308_v50 = vpop.f32.mrf.mxu1 }
  0xba   : > { %v299_v51 = vadd.f32 %v722_v14, %v298_v49  ;;  %v309_v52 = vadd.f32 %v722_v14, %v308_v50 }
  0xbb   : > { %v341_v53 = vmax.f32 %v317_v47, 0.0  ;;  %v345_v54 = vmax.f32 %v327_v48, 0.0 }
  0xbc   : > { %v334_v55 = vmax.f32 %v299_v51, 0.0  ;;  %v338_v56 = vmax.f32 %v309_v52, 0.0 }
  0xbd   : > { %357 = vst [vmem:[%s728_s17 + $0x50] sm:$0xff] %v341_v53 }
  0xbe   : > { %361 = vst [vmem:[%s728_s17 + $0x70] sm:$0xff] %v345_v54 }
  0xbf   : > { %350 = vst [vmem:[%s728_s17 + $0x18] sm:$0xff] %v334_v55 }
  0xc0   : > { %354 = vst [vmem:[%s728_s17 + $0x38] sm:$0xff] %v338_v56  ;;  %v318_v57 = vpop.f32.mrf.mxu2  ;;  %v328_v58 = vpop.f32.mrf.mxu3 }
  0xc1   : > { %v319_v59 = vadd.f32 %v722_v14, %v318_v57  ;;  %v329_v60 = vadd.f32 %v722_v14, %v328_v58 }
  0xc3   : > { %v342_v61 = vmax.f32 %v319_v59, 0.0  ;;  %v346_v62 = vmax.f32 %v329_v60, 0.0 }
  0xc5   : > { %358 = vst [vmem:[%s728_s17 + $0x58] sm:$0xff] %v342_v61 }
  0xc6   : > { %362 = vst [vmem:[%s728_s17 + $0x78] sm:$0xff] %v346_v62 }
  0xc7   : > { %590 = shalt.err (!%p587_p3)
}
  0xc8   : > { %s627_s8 = smov 128   ;;  %s628_s9 = smov 8  }
  0xc9   : > { %521 = dma.vmem_to_hbm [thread:$0]  (%p687_p5), %s377_s26, 2048, %s379_s16, %s364_s27, %s627_s8, %s627_s8, %s628_s9  }
  0xca PF: > { %p527_p4 = scmp.ge.s32.totalorder %s625_s15, 2  ;;  %s393_s10 = sand.u32 1, %s613_s12  }
  0xcb   : > { %s394_s11 = scalar_lea.sflag [#allocation3], %s393_s10 }
  0xcc   : > { %p524_p7 = pnand %p527_p4, %p691_p6 }
  0xce   : > { %p525_p8 = pneg %p524_p7 }
  0xd0   : > { %608 = dma.done.wait (%p525_p8), %s394_s11, 2048  }
  0xd1   : > { %610 = vsyncadd (%p525_p8), %s394_s11, 4294965248  ;;  %p13_p9 = scmp.ge.s32.totalorder %s674_s18, 6   ;;  %s800_s12 = smov %s617_s13 }
  0xd2   : > { %s801_s13 = smov %s621_s14  ;;  %s802_s14 = smov %s685_s21 }
  0xd3   : > { %s803_s15 = smov %s674_s18  ;;  %15 = sbr.rel (!%p13_p9) target bundleno = 3 (0x3), region = 67 }
  0xd8   :  { %400 = vsyncpa [#allocation3], 1 }
  0xd9   :  { %402 = vsyncpa [#allocation3 + $0x1], 1 }

</bundles_post_ra>
